<compile_context>
chip_gen: v5e
topology: v5e:2x2
jax: 0.10.0
libtpu: 0.0.40
codegen_flags: <defaults>
</compile_context>

<pallas_src>
import jax
import jax.numpy as jnp
import numpy as np
from jax import lax
from jax.experimental import pallas as pl
from jax.experimental.pallas import tpu as pltpu

_NEG_BIG = -1e30  # bias for padded vocab columns -> exp() underflows to 0


def _round_up(x, m):
    return (x + m - 1) // m * m


# ---------------------------------------------------------------------------
# Path A: whole (padded) weight resident in VMEM, fused log-softmax, one pass.
# ---------------------------------------------------------------------------
def _resident_kernel(x_ref, w_ref, b_ref, o_ref):
    # x_ref: (tm, d_model)  w_ref: (Vp, d_model)  b_ref: (1, Vp) f32  o_ref: (tm, Vp)
    logits = lax.dot_general(
        x_ref[...], w_ref[...],
        dimension_numbers=(((1,), (1,)), ((), ())),     # contract on d_model (NT form)
        preferred_element_type=jnp.float32,
    ) + b_ref[...]
    m = jnp.max(logits, axis=-1, keepdims=True)
    z = logits - m
    lse = jnp.log(jnp.sum(jnp.exp(z), axis=-1, keepdims=True))
    o_ref[...] = (z - lse).astype(o_ref.dtype)


# ---------------------------------------------------------------------------
# Path B: vocab-tiled, two passes over the vocab axis per row tile.
#   pass 0: accumulate running max / sum-exp (online log-sum-exp) in scratch
#   pass 1: recompute the logits tile and write the normalized log-probs
# ---------------------------------------------------------------------------
def _tiled_kernel(x_ref, w_ref, b_ref, o_ref, m_ref, l_ref):
    p = pl.program_id(1)   # pass: 0 = stats, 1 = write
    j = pl.program_id(2)   # vocab tile index

    logits = lax.dot_general(
        x_ref[...], w_ref[...],
        dimension_numbers=(((1,), (1,)), ((), ())),
        preferred_element_type=jnp.float32,
    ) + b_ref[...]

    @pl.when(jnp.logical_and(p == 0, j == 0))
    def _():
        m_ref[...] = jnp.full(m_ref.shape, -jnp.inf, dtype=m_ref.dtype)
        l_ref[...] = jnp.zeros(l_ref.shape, dtype=l_ref.dtype)

    @pl.when(p == 0)
    def _():
        m_prev = m_ref[...]
        m_new = jnp.maximum(m_prev, jnp.max(logits, axis=-1, keepdims=True))
        l_ref[...] = (l_ref[...] * jnp.exp(m_prev - m_new)
                      + jnp.sum(jnp.exp(logits - m_new), axis=-1, keepdims=True))
        m_ref[...] = m_new

    @pl.when(p == 1)
    def _():
        lse = m_ref[...] + jnp.log(l_ref[...])
        o_ref[...] = (logits - lse).astype(o_ref.dtype)


def generator_forward(x, weight, bias, *,
                      row_tile=256, vocab_tile=None,
                      matmul_dtype=jnp.bfloat16, out_dtype=None,
                      vmem_budget_bytes=48 * 1024 * 1024):
    """log_softmax(x @ weight.T + bias, axis=-1).

    x: (..., d_model); weight: (vocab, d_model); bias: (vocab,).
    vocab_tile=None -> auto (resident weight if it fits the VMEM budget,
    else tiled with tn=512); pass an int to force the vocab-tiled path.
    """
    out_dtype = out_dtype or x.dtype            # bf16 output also supported
    *lead, d_model = x.shape
    vocab = weight.shape[0]
    M = int(np.prod(lead)) if lead else 1

    # Row tiling: pad rows so every tile is full; padded rows are sliced off.
    tm = _round_up(min(int(row_tile), _round_up(max(M, 1), 16)), 16)
    Mp = _round_up(M, tm)

    mm_bytes = jnp.dtype(matmul_dtype).itemsize
    out_bytes = jnp.dtype(out_dtype).itemsize

    Vp_full = _round_up(vocab, 128)
    resident_vmem = (Vp_full * d_model * mm_bytes          # weight (single buffer)
                     + 2 * tm * Vp_full * out_bytes        # output (double buffer)
                     + 2 * tm * d_model * mm_bytes         # x tile (double buffer)
                     + Vp_full * 4)                        # bias
    use_resident = vocab_tile is None and resident_vmem <= vmem_budget_bytes

    x2 = x.reshape(M, d_model)
    if Mp != M:
        x2 = jnp.pad(x2, ((0, Mp - M), (0, 0)))
    x2 = x2.astype(matmul_dtype)                 # no-op if already bf16
    wq = weight.astype(matmul_dtype)             # (vocab, d_model) -- NOT transposed
    b1 = bias.astype(jnp.float32)

    cparams = pltpu.CompilerParams(
        dimension_semantics=("parallel",) if use_resident
        else ("parallel", "arbitrary", "arbitrary"),
        vmem_limit_bytes=64 * 1024 * 1024)

    if use_resident:
        Vp = Vp_full
        if Vp != vocab:
            wq = jnp.pad(wq, ((0, Vp - vocab), (0, 0)))
            b1 = jnp.pad(b1, (0, Vp - vocab), constant_values=_NEG_BIG)
        b2 = b1.reshape(1, Vp)
        out = pl.pallas_call(
            _resident_kernel,
            out_shape=jax.ShapeDtypeStruct((Mp, Vp), out_dtype),
            grid_spec=pltpu.PrefetchScalarGridSpec(
                num_scalar_prefetch=0,
                grid=(Mp // tm,),
                in_specs=[
                    pl.BlockSpec((tm, d_model), lambda i: (i, 0)),
                    # grid-invariant weight & bias: single-buffer to reclaim VMEM
                    pl.BlockSpec((Vp, d_model), lambda i: (0, 0),
                                 pipeline_mode=pl.Buffered(1)),
                    pl.BlockSpec((1, Vp), lambda i: (0, 0),
                                 pipeline_mode=pl.Buffered(1)),
                ],
                out_specs=pl.BlockSpec((tm, Vp), lambda i: (i, 0)),
            ),
            compiler_params=cparams,
        )(x2, wq, b2)
    else:
        tn = int(vocab_tile) if vocab_tile is not None else 512
        tn = min(max(128, _round_up(tn, 128)), _round_up(vocab, 128))
        Vp = _round_up(vocab, tn)
        if Vp != vocab:
            wq = jnp.pad(wq, ((0, Vp - vocab), (0, 0)))
            b1 = jnp.pad(b1, (0, Vp - vocab), constant_values=_NEG_BIG)
        b2 = b1.reshape(1, Vp)
        nt = Vp // tn
        out = pl.pallas_call(
            _tiled_kernel,
            out_shape=jax.ShapeDtypeStruct((Mp, Vp), out_dtype),
            grid_spec=pltpu.PrefetchScalarGridSpec(
                num_scalar_prefetch=0,
                grid=(Mp // tm, 2, nt),
                in_specs=[
                    pl.BlockSpec((tm, d_model), lambda i, p, j: (i, 0)),
                    pl.BlockSpec((tn, d_model), lambda i, p, j: (j, 0)),
                    pl.BlockSpec((1, tn), lambda i, p, j: (0, j)),
                ],
                # During pass 0 the (unwritten) output buffer is parked on column 0;
                # every output block is fully written exactly once during pass 1,
                # and its writeback happens only after that write.
                out_specs=pl.BlockSpec((tm, tn), lambda i, p, j: (i, p * j)),
                scratch_shapes=[
                    pltpu.VMEM((tm, 1), jnp.float32),   # running max
                    pltpu.VMEM((tm, 1), jnp.float32),   # running sum-exp
                ],
            ),
            compiler_params=cparams,
        )(x2, wq, b2)

    out = out[:M, :vocab]
    return out.reshape(*lead, vocab)


if __name__ == "__main__":
    # Small shapes; deliberately non-aligned rows/vocab to exercise padding.
    batch, seq, d_model, vocab = 2, 9, 32, 320

    key = jax.random.PRNGKey(0)
    kx, kw, kb = jax.random.split(key, 3)

    # Deterministic init mimicking nn.Linear's uniform(-1/sqrt(fan_in), ...).
    bound = 1.0 / np.sqrt(d_model)
    weight = jax.random.uniform(kw, (vocab, d_model), jnp.float32, -bound, bound)
    bias = jax.random.uniform(kb, (vocab,), jnp.float32, -bound, bound)
    x = jax.random.normal(kx, (batch, seq, d_model), jnp.float32)

    # Reference with the same bf16 matmul inputs / f32 accumulation as the kernel.
    logits_ref = jnp.dot(x.astype(jnp.bfloat16), weight.astype(jnp.bfloat16).T,
                         preferred_element_type=jnp.float32) + bias
    ref = np.asarray(jax.nn.log_softmax(logits_ref, axis=-1))

    # Path A: weight resident in VMEM (small vocab -> picked automatically).
    y_res = jax.block_until_ready(generator_forward(x, weight, bias))
    np.testing.assert_allclose(np.asarray(y_res), ref, atol=1e-4, rtol=1e-4)

    # Path B: vocab-tiled two-pass online log-softmax (large-vocab / v7x path).
    y_tiled = jax.block_until_ready(generator_forward(x, weight, bias, vocab_tile=128))
    np.testing.assert_allclose(np.asarray(y_tiled), ref, atol=1e-4, rtol=1e-4)

    print("KERNEL_OK")
</pallas_src>

<mosaic_0001>
module attributes {stable_mosaic.version = 11 : i64} {
  func.func @_resident_kernel(%arg0: i32, %arg1: memref<32x32xbf16, #tpu.memory_space<vmem>>, %arg2: memref<384x32xbf16, #tpu.memory_space<vmem>>, %arg3: memref<1x384xf32, #tpu.memory_space<vmem>>, %arg4: memref<32x384xf32, #tpu.memory_space<vmem>>) attributes {dimension_semantics = [#tpu.dimension_semantics<parallel>], iteration_bounds = array<i64: 1>, scalar_prefetch = 0 : i64, scratch_operands = 0 : i64, tpu.core_type = #tpu.core_type<tc>, window_params = [{transform_indices = @transform_0, window_bounds = array<i64: 32, 32>}, {pipeline_mode = #tpu.pipeline_mode<synchronous>, transform_indices = @transform_1, window_bounds = array<i64: 384, 32>}, {pipeline_mode = #tpu.pipeline_mode<synchronous>, transform_indices = @transform_2, window_bounds = array<i64: 1, 384>}, {transform_indices = @transform_3, window_bounds = array<i64: 32, 384>}]} {
    %c0 = arith.constant 0 : index
    %c0_0 = arith.constant 0 : index
    %0 = vector.load %arg1[%c0, %c0_0] : memref<32x32xbf16, #tpu.memory_space<vmem>>, vector<32x32xbf16>
    %c0_1 = arith.constant 0 : index
    %c0_2 = arith.constant 0 : index
    %1 = vector.load %arg2[%c0_1, %c0_2] : memref<384x32xbf16, #tpu.memory_space<vmem>>, vector<384x32xbf16>
    %cst = arith.constant dense<0.000000e+00> : vector<32x384xf32>
    %2 = tpu.matmul %0, %1, %cst {dimension_numbers = #tpu.dot_dimension_numbers<[1], [1], [0], [0], [0, 0, 1, 0], [], []>} : vector<32x32xbf16>, vector<384x32xbf16>, vector<32x384xf32> -> vector<32x384xf32>
    %c0_3 = arith.constant 0 : index
    %c0_4 = arith.constant 0 : index
    %3 = vector.load %arg3[%c0_3, %c0_4] : memref<1x384xf32, #tpu.memory_space<vmem>>, vector<1x384xf32>
    %4 = vector.broadcast %3 : vector<1x384xf32> to vector<32x384xf32>
    %5 = arith.addf %2, %4 : vector<32x384xf32>
    %cst_5 = arith.constant dense<0xFF800000> : vector<32xf32>
    %6 = vector.multi_reduction <maximumf>, %5, %cst_5 [1] : vector<32x384xf32> to vector<32xf32>
    %7 = vector.shape_cast %6 : vector<32xf32> to vector<32x1xf32>
    %8 = vector.broadcast %7 : vector<32x1xf32> to vector<32x384xf32>
    %9 = arith.subf %5, %8 : vector<32x384xf32>
    %10 = math.exp %9 : vector<32x384xf32>
    %cst_6 = arith.constant dense<0.000000e+00> : vector<32xf32>
    %11 = vector.multi_reduction <add>, %10, %cst_6 [1] : vector<32x384xf32> to vector<32xf32>
    %12 = vector.shape_cast %11 : vector<32xf32> to vector<32x1xf32>
    %13 = math.log %12 : vector<32x1xf32>
    %14 = vector.broadcast %13 : vector<32x1xf32> to vector<32x384xf32>
    %15 = arith.subf %9, %14 : vector<32x384xf32>
    %c0_7 = arith.constant 0 : index
    %c0_8 = arith.constant 0 : index
    %16 = vector.load %arg4[%c0_7, %c0_8] : memref<32x384xf32, #tpu.memory_space<vmem>>, vector<32x384xf32>
    tpu.vector_store %arg4[%c0_7, %c0_8], %15 {strides = array<i32>} : memref<32x384xf32, #tpu.memory_space<vmem>>, vector<32x384xf32>,
    return
  }
  func.func @transform_0(%arg0: i32) -> (i32, i32) {
    %c0_i32 = arith.constant 0 : i32
    %c0_i32_0 = arith.constant 0 : i32
    return %arg0, %c0_i32 : i32, i32
  }
  func.func @transform_1(%arg0: i32) -> (i32, i32) {
    %c0_i32 = arith.constant 0 : i32
    %c0_i32_0 = arith.constant 0 : i32
    %c0_i32_1 = arith.constant 0 : i32
    return %c0_i32, %c0_i32_0 : i32, i32
  }
  func.func @transform_2(%arg0: i32) -> (i32, i32) {
    %c0_i32 = arith.constant 0 : i32
    %c0_i32_0 = arith.constant 0 : i32
    %c0_i32_1 = arith.constant 0 : i32
    return %c0_i32, %c0_i32_0 : i32, i32
  }
  func.func @transform_3(%arg0: i32) -> (i32, i32) {
    %c0_i32 = arith.constant 0 : i32
    %c0_i32_0 = arith.constant 0 : i32
    return %arg0, %c0_i32 : i32, i32
  }
}

</mosaic_0001>

<bundles_post_ra>
// kernel: tpu_custom_call.1
= control target key start
LH: loop header
LB: loop body
LE: loop exit
PB: predicated region body
PF: predicated region fallthrough
CT: control target
= control target key end

     0   :  { %vm205_vm0 = vcmask 261120   ;;  %s849_s0 = inlined_call_operand.vmem [shape: bf16[32,32], index: 0, kind: input, shape index: {}]   ;;  %s850_s1 = inlined_call_operand.vmem [shape: bf16[384,32], index: 1, kind: input, shape index: {}]   ;;  %s851_s2 = inlined_call_operand.vmem [shape: f32[1,384], index: 2, kind: input, shape index: {}]   ;;  %s852_s3 = inlined_call_operand.hbm [shape: f32[32,384], index: 3, kind: output, shape index: {}]  }
   0x1   :  { %v578_v0 = vld [vmem:[%s850_s1 + $0x38] sm:$0xff]  ;;  %v577_v6 = vld [vmem:[%s850_s1 + $0x30] sm:$0xff] }
   0x2   :  { %v586_v1 = vld [vmem:[%s850_s1 + $0x78] sm:$0xff]  ;;  %v234_v3 = vsel %vm205_vm0, %v578_v0, 0  ;;  %v585_v7 = vld [vmem:[%s850_s1 + $0x70] sm:$0xff] }
   0x3   :  { %v594_v2 = vld [vmem:[%s850_s1 + $0xb8] sm:$0xff]  ;;  %v258_v4 = vsel %vm205_vm0, %v586_v1, 0  ;;  %284 = vmatpush.bf16.xpose.msra.mxu0 %v234_v3  ;;  %595 = vmatpush.bf16.xpose.msra.mxu3 %v234_v3  ;;  %v593_v8 = vld [vmem:[%s850_s1 + $0xb0] sm:$0xff] }
   0x4   :  { %v282_v5 = vsel %vm205_vm0, %v594_v2, 0  ;;  %303 = vmatpush.bf16.xpose.msra.mxu1 %v258_v4 }
   0x5   :  { %322 = vmatpush.bf16.xpose.msra.mxu2 %v282_v5 }
   0x6   :  { %8 = vsyncpa [#allocation3], 0  ;;  %v231_v9 = vsel %vm205_vm0, %v577_v6, 0  ;;  %v255_v10 = vsel %vm205_vm0, %v585_v7, 0  ;;  %v279_v11 = vsel %vm205_vm0, %v593_v8, 0  ;;  %v576_v12 = vld [vmem:[%s850_s1 + $0x28] sm:$0xff] }
   0x7   :  { %v584_v13 = vld [vmem:[%s850_s1 + $0x68] sm:$0xff]  ;;  %v228_v15 = vsel %vm205_vm0, %v576_v12, 0  ;;  %v575_v18 = vld [vmem:[%s850_s1 + $0x20] sm:$0xff]  ;;  %v574_v24 = vld [vmem:[%s850_s1 + $0x18] sm:$0xff]  ;;  %s447_s13 = sshll.u32 %s852_s3, 4  ;;  %s665_s14 = smov 384   ;;  %s448_s13 = int_to_ptr.hbm [resolvable:$true] %s447_s13 }
   0x8   :  { %v592_v14 = vld [vmem:[%s850_s1 + $0xa8] sm:$0xff]  ;;  %v252_v16 = vsel %vm205_vm0, %v584_v13, 0  ;;  %v583_v19 = vld [vmem:[%s850_s1 + $0x60] sm:$0xff]  ;;  %v225_v21 = vsel %vm205_vm0, %v575_v18, 0  ;;  %v582_v25 = vld [vmem:[%s850_s1 + $0x58] sm:$0xff]  ;;  %v222_v27 = vsel %vm205_vm0, %v574_v24, 0 }
   0x9   :  { %v276_v17 = vsel %vm205_vm0, %v592_v14, 0  ;;  %v591_v20 = vld [vmem:[%s850_s1 + $0xa0] sm:$0xff]  ;;  %v249_v22 = vsel %vm205_vm0, %v583_v19, 0  ;;  %v590_v26 = vld [vmem:[%s850_s1 + $0x98] sm:$0xff]  ;;  %v246_v28 = vsel %vm205_vm0, %v582_v25, 0  ;;  %v573_v30 = vld [vmem:[%s850_s1 + $0x10] sm:$0xff] }
   0xa   :  { %v273_v23 = vsel %vm205_vm0, %v591_v20, 0  ;;  %v270_v29 = vsel %vm205_vm0, %v590_v26, 0  ;;  %v581_v31 = vld [vmem:[%s850_s1 + $0x50] sm:$0xff]  ;;  %v219_v33 = vsel %vm205_vm0, %v573_v30, 0  ;;  %v572_v36 = vld [vmem:[%s850_s1 + $0x8] sm:$0xff]  ;;  %v571_v42 = vld [vmem:[%s850_s1] sm:$0xff] }
   0xb   :  { %285 = vmatpush.bf16.xpose.msra.mxu0 %v231_v9  ;;  %596 = vmatpush.bf16.xpose.msra.mxu3 %v231_v9  ;;  %v589_v32 = vld [vmem:[%s850_s1 + $0x90] sm:$0xff]  ;;  %v243_v34 = vsel %vm205_vm0, %v581_v31, 0  ;;  %v580_v37 = vld [vmem:[%s850_s1 + $0x48] sm:$0xff]  ;;  %v216_v39 = vsel %vm205_vm0, %v572_v36, 0  ;;  %v579_v43 = vld [vmem:[%s850_s1 + $0x40] sm:$0xff]  ;;  %v213_v45 = vsel %vm205_vm0, %v571_v42, 0 }
   0xc   :  { %304 = vmatpush.bf16.xpose.msra.mxu1 %v255_v10  ;;  %v267_v35 = vsel %vm205_vm0, %v589_v32, 0  ;;  %v588_v38 = vld [vmem:[%s850_s1 + $0x88] sm:$0xff]  ;;  %v240_v40 = vsel %vm205_vm0, %v580_v37, 0  ;;  %v587_v44 = vld [vmem:[%s850_s1 + $0x80] sm:$0xff]  ;;  %v237_v46 = vsel %vm205_vm0, %v579_v43, 0  ;;  %s666_s15 = smov 24  }
   0xd   :  { %323 = vmatpush.bf16.xpose.msra.mxu2 %v279_v11  ;;  %v264_v41 = vsel %vm205_vm0, %v588_v38, 0  ;;  %v261_v47 = vsel %vm205_vm0, %v587_v44, 0  ;;  %v569_v48 = vld [vmem:[%s849_s0] sm:$0xff]  ;;  %v570_v49 = vld [vmem:[%s849_s0 + $0x8] sm:$0xff]  ;;  %s664_s0 = smov [#allocation2]  }
   0xe   :  { %v67_v50 = vld [vmem:[%s851_s2] sm:$0x7]  ;;  %s445_s2 = sshll.u32 %s664_s0, 4  ;;  %s446_s2 = int_to_ptr.vmem [resolvable:$true] %s445_s2 }
   0xf   :  { %v69_v51 = vperm.slane %v67_v50, 0  ;;  %v70_v52 = vperm.slane %v67_v50, 1  ;;  %v71_v57 = vperm.slane %v67_v50, 2 }
  0x13   :  { %286 = vmatpush.bf16.xpose.msra.mxu0 %v228_v15  ;;  %597 = vmatpush.bf16.xpose.msra.mxu3 %v228_v15 }
  0x14   :  { %305 = vmatpush.bf16.xpose.msra.mxu1 %v252_v16 }
  0x15   :  { %324 = vmatpush.bf16.xpose.msra.mxu2 %v276_v17 }
  0x1b   :  { %287 = vmatpush.bf16.xpose.msra.mxu0 %v225_v21  ;;  %598 = vmatpush.bf16.xpose.msra.mxu3 %v225_v21 }
  0x1c   :  { %306 = vmatpush.bf16.xpose.msra.mxu1 %v249_v22 }
  0x1d   :  { %325 = vmatpush.bf16.xpose.msra.mxu2 %v273_v23 }
  0x23   :  { %288 = vmatpush.bf16.xpose.msra.mxu0 %v222_v27  ;;  %599 = vmatpush.bf16.xpose.msra.mxu3 %v222_v27 }
  0x24   :  { %307 = vmatpush.bf16.xpose.msra.mxu1 %v246_v28 }
  0x25   :  { %326 = vmatpush.bf16.xpose.msra.mxu2 %v270_v29 }
  0x2b   :  { %289 = vmatpush.bf16.xpose.msra.mxu0 %v219_v33  ;;  %600 = vmatpush.bf16.xpose.msra.mxu3 %v219_v33 }
  0x2c   :  { %308 = vmatpush.bf16.xpose.msra.mxu1 %v243_v34 }
  0x2d   :  { %327 = vmatpush.bf16.xpose.msra.mxu2 %v267_v35 }
  0x33   :  { %290 = vmatpush.bf16.xpose.msra.mxu0 %v216_v39  ;;  %601 = vmatpush.bf16.xpose.msra.mxu3 %v216_v39 }
  0x34   :  { %309 = vmatpush.bf16.xpose.msra.mxu1 %v240_v40 }
  0x35   :  { %328 = vmatpush.bf16.xpose.msra.mxu2 %v264_v41 }
  0x3b   :  { %291 = vmatpush.bf16.xpose.msra.mxu0 %v213_v45  ;;  %602 = vmatpush.bf16.xpose.msra.mxu3 %v213_v45 }
  0x3c   :  { %310 = vmatpush.bf16.xpose.msra.mxu1 %v237_v46 }
  0x3d   :  { %329 = vmatpush.bf16.xpose.msra.mxu2 %v261_v47 }
  0x42   :  { %563 = vmatmul.msk.bf16.vlgmr.msra.gmra.mxu0 %vm205_vm0, %v569_v48  ;;  %564 = vmatmul.msk.bf16.vlgmr.msra.gmra.mxu3 %vm205_vm0, %v570_v49 }
  0x43   :  { %565 = vmatmul.msk.bf16.vlgmr.msra.gmra.mxu1 %vm205_vm0, %v569_v48 }
  0x44   :  { %567 = vmatmul.msk.bf16.vlgmr.msra.gmra.mxu2 %vm205_vm0, %v569_v48 }
  0x53   :  { %566 = vmatmul.msk.bf16.gmra.mxu1 %vm205_vm0, %v570_v49 }
  0x54   :  { %568 = vmatmul.msk.bf16.gmra.mxu2 %vm205_vm0, %v570_v49 }
  0xbf   :  { %v293_v53 = vpop.f32.mrf.mxu0 }
  0xc0   :  { %v312_v54 = vpop.f32.mrf.mxu1  ;;  %v294_v55 = vadd.f32 %v293_v53, %v69_v51 }
  0xc1   :  { %v313_v56 = vadd.f32 %v312_v54, %v70_v52 }
  0xc3   :  { %v341_v58 = vmax.f32 %v294_v55, %v313_v56 }
  0xc5   :  { %v298_v6 = vpop.f32.mrf.mxu3 }
  0xc6   :  { %v299_v7 = vadd.f32 %v298_v6, %v69_v51 }
  0xc7   :  { %v331_v59 = vpop.f32.mrf.mxu2  ;;  %v295_v62 = vpop.f32.mrf.mxu0 }
  0xc8   :  { %v332_v60 = vadd.f32 %v331_v59, %v71_v57  ;;  %v314_v61 = vpop.f32.mrf.mxu1  ;;  %v296_v0 = vadd.f32 %v295_v62, %v69_v51 }
  0xc9   :  { %v315_v1 = vadd.f32 %v314_v61, %v70_v52 }
  0xca   :  { %v342_v63 = vmax.f32 %v341_v58, %v332_v60 }
  0xcb   :  { %v345_v3 = vmax.f32 %v296_v0, %v315_v1 }
  0xcc   :  { %343 = vmax.xlane.f32.xlu0 %v342_v63 }
  0xcd   :  { %v300_v15 = vpop.f32.mrf.mxu3 }
  0xce   :  { %v301_v17 = vadd.f32 %v300_v15, %v69_v51 }
  0xcf   :  { %v333_v2 = vpop.f32.mrf.mxu2 }
  0xd0   :  { %v334_v4 = vadd.f32 %v333_v2, %v71_v57  ;;  %v317_v5 = vpop.f32.mrf.mxu1 }
  0xd1   :  { %v318_v8 = vadd.f32 %v317_v5, %v70_v52 }
  0xd2   :  { %v346_v9 = vmax.f32 %v345_v3, %v334_v4 }
  0xd3   :  { %v349_v10 = vmax.f32 %v299_v7, %v318_v8 }
  0xd4   :  { %347 = vmax.xlane.f32.xlu0 %v346_v9 }
  0xd7   :  { %v336_v11 = vpop.f32.mrf.mxu2 }
  0xd8   :  { %v337_v12 = vadd.f32 %v336_v11, %v71_v57  ;;  %v319_v13 = vpop.f32.mrf.mxu1 }
  0xd9   :  { %v320_v16 = vadd.f32 %v319_v13, %v70_v52 }
  0xda   :  { %v350_v14 = vmax.f32 %v349_v10, %v337_v12 }
  0xdb   :  { %v353_v19 = vmax.f32 %v301_v17, %v320_v16 }
  0xdc   :  { %351 = vmax.xlane.f32.xlu1 %v350_v14 }
  0xdf   :  { %v338_v18 = vpop.f32.mrf.mxu2 }
  0xe0   :  { %v339_v20 = vadd.f32 %v338_v18, %v71_v57 }
  0xe2   :  { %v354_v21 = vmax.f32 %v353_v19, %v339_v20 }
  0xe4   :  { %355 = vmax.xlane.f32.xlu1 %v354_v21 }
 0x13f   :  { %v344_v22 = vpop.xlane.xlu0 %343 }
 0x140   :  { %v798_v23 = vsub.f32 %v294_v55, %v344_v22  ;;  %v800_v24 = vsub.f32 %v313_v56, %v344_v22  ;;  %v802_v25 = vsub.f32 %v332_v60, %v344_v22 }
 0x142   :  { %v369_v26 = vmul.f32 1.442695, %v798_v23  ;;  %v371_v27 = vmul.f32 1.442695, %v800_v24  ;;  %v373_v28 = vmul.f32 1.442695, %v802_v25 }
 0x144   :  { %606 = vpow2.f32 %v369_v26 }
 0x145   :  { %608 = vpow2.f32 %v371_v27 }
 0x146   :  { %610 = vpow2.f32 %v373_v28 }
 0x147   :  { %v348_v29 = vpop.xlane.xlu0 %347 }
 0x148   :  { %v807_v30 = vsub.f32 %v296_v0, %v348_v29  ;;  %v809_v31 = vsub.f32 %v315_v1, %v348_v29  ;;  %v811_v32 = vsub.f32 %v334_v4, %v348_v29 }
 0x14a   :  { %v607_v33 = vpop.eup %606  ;;  %v375_v34 = vmul.f32 1.442695, %v807_v30  ;;  %v377_v35 = vmul.f32 1.442695, %v809_v31  ;;  %v379_v37 = vmul.f32 1.442695, %v811_v32 }
 0x14b   :  { %v609_v36 = vpop.eup %608 }
 0x14c   :  { %612 = vpow2.f32 %v375_v34  ;;  %v393_v38 = vadd.f32 %v609_v36, %v607_v33  ;;  %v611_v39 = vpop.eup %610 }
 0x14d   :  { %614 = vpow2.f32 %v377_v35 }
 0x14e   :  { %v394_v40 = vadd.f32 %v611_v39, %v393_v38  ;;  %616 = vpow2.f32 %v379_v37 }
 0x14f   :  { %v352_v41 = vpop.xlane.xlu1 %351 }
 0x150   :  { %v816_v42 = vsub.f32 %v299_v7, %v352_v41  ;;  %v818_v43 = vsub.f32 %v318_v8, %v352_v41  ;;  %v820_v44 = vsub.f32 %v337_v12, %v352_v41  ;;  %395 = vadd.xlane.f32.xlu2 %v394_v40 }
 0x152   :  { %v613_v45 = vpop.eup %612  ;;  %v381_v46 = vmul.f32 1.442695, %v816_v42  ;;  %v383_v47 = vmul.f32 1.442695, %v818_v43  ;;  %v385_v49 = vmul.f32 1.442695, %v820_v44 }
 0x153   :  { %v615_v48 = vpop.eup %614 }
 0x154   :  { %618 = vpow2.f32 %v381_v46  ;;  %v397_v50 = vadd.f32 %v615_v48, %v613_v45  ;;  %v617_v51 = vpop.eup %616 }
 0x155   :  { %620 = vpow2.f32 %v383_v47 }
 0x156   :  { %v398_v52 = vadd.f32 %v617_v51, %v397_v50  ;;  %622 = vpow2.f32 %v385_v49 }
 0x157   :  { %v356_v53 = vpop.xlane.xlu1 %355 }
 0x158   :  { %v825_v54 = vsub.f32 %v301_v17, %v356_v53  ;;  %v827_v55 = vsub.f32 %v320_v16, %v356_v53  ;;  %v829_v56 = vsub.f32 %v339_v20, %v356_v53  ;;  %399 = vadd.xlane.f32.xlu2 %v398_v52 }
 0x15a   :  { %v619_v57 = vpop.eup %618  ;;  %v387_v58 = vmul.f32 1.442695, %v825_v54  ;;  %v389_v59 = vmul.f32 1.442695, %v827_v55  ;;  %v391_v61 = vmul.f32 1.442695, %v829_v56 }
 0x15b   :  { %v621_v60 = vpop.eup %620 }
 0x15c   :  { %624 = vpow2.f32 %v387_v58  ;;  %v401_v62 = vadd.f32 %v621_v60, %v619_v57  ;;  %v623_v63 = vpop.eup %622 }
 0x15d   :  { %626 = vpow2.f32 %v389_v59 }
 0x15e   :  { %v402_v0 = vadd.f32 %v623_v63, %v401_v62  ;;  %628 = vpow2.f32 %v391_v61 }
 0x160   :  { %403 = vadd.xlane.f32.xlu0 %v402_v0 }
 0x162   :  { %v625_v1 = vpop.eup %624 }
 0x163   :  { %v627_v2 = vpop.eup %626 }
 0x164   :  { %v405_v3 = vadd.f32 %v627_v2, %v625_v1  ;;  %v629_v4 = vpop.eup %628 }
 0x166   :  { %v406_v5 = vadd.f32 %v629_v4, %v405_v3 }
 0x168   :  { %407 = vadd.xlane.f32.xlu1 %v406_v5 }
 0x1c3   :  { %v396_v6 = vpop.xlane.xlu2 %395 }
 0x1c4   :  { %630 = vlog2.f32 %v396_v6 }
 0x1ca   :  { %v631_v7 = vpop.eup %630 }
 0x1cb   :  { %v410_v8 = vmul.f32 0.6931472, %v631_v7  ;;  %v400_v9 = vpop.xlane.xlu2 %399 }
 0x1cc   :  { %632 = vlog2.f32 %v400_v9 }
 0x1cd   :  { %v417_v10 = vsub.f32 %v798_v23, %v410_v8  ;;  %v418_v11 = vsub.f32 %v800_v24, %v410_v8  ;;  %v419_v12 = vsub.f32 %v802_v25, %v410_v8 }
 0x1cf   :  { %429 = vst [vmem:[#allocation2] sm:$0xff] %v417_v10 }
 0x1d0   :  { %430 = vst [vmem:[#allocation2 + $0x8] sm:$0xff] %v418_v11 }
 0x1d1   :  { %431 = vst [vmem:[#allocation2 + $0x10] sm:$0xff] %v419_v12 }
 0x1d2   :  { %v633_v13 = vpop.eup %632 }
 0x1d3   :  { %v412_v14 = vmul.f32 0.6931472, %v633_v13  ;;  %v404_v15 = vpop.xlane.xlu0 %403 }
 0x1d4   :  { %634 = vlog2.f32 %v404_v15 }
 0x1d5   :  { %v420_v16 = vsub.f32 %v807_v30, %v412_v14  ;;  %v421_v17 = vsub.f32 %v809_v31, %v412_v14  ;;  %v422_v18 = vsub.f32 %v811_v32, %v412_v14 }
 0x1d7   :  { %432 = vst [vmem:[#allocation2 + $0x18] sm:$0xff] %v420_v16 }
 0x1d8   :  { %433 = vst [vmem:[#allocation2 + $0x20] sm:$0xff] %v421_v17 }
 0x1d9   :  { %434 = vst [vmem:[#allocation2 + $0x28] sm:$0xff] %v422_v18 }
 0x1da   :  { %v635_v19 = vpop.eup %634 }
 0x1db   :  { %v414_v20 = vmul.f32 0.6931472, %v635_v19  ;;  %v408_v21 = vpop.xlane.xlu1 %407 }
 0x1dc   :  { %636 = vlog2.f32 %v408_v21 }
 0x1dd   :  { %v423_v22 = vsub.f32 %v816_v42, %v414_v20  ;;  %v424_v23 = vsub.f32 %v818_v43, %v414_v20  ;;  %v425_v24 = vsub.f32 %v820_v44, %v414_v20 }
 0x1df   :  { %435 = vst [vmem:[#allocation2 + $0x30] sm:$0xff] %v423_v22 }
 0x1e0   :  { %436 = vst [vmem:[#allocation2 + $0x38] sm:$0xff] %v424_v23 }
 0x1e1   :  { %437 = vst [vmem:[#allocation2 + $0x40] sm:$0xff] %v425_v24 }
 0x1e2   :  { %v637_v25 = vpop.eup %636 }
 0x1e3   :  { %v416_v26 = vmul.f32 0.6931472, %v637_v25 }
 0x1e5   :  { %v426_v27 = vsub.f32 %v825_v54, %v416_v26  ;;  %v427_v28 = vsub.f32 %v827_v55, %v416_v26  ;;  %v428_v29 = vsub.f32 %v829_v56, %v416_v26 }
 0x1e7   :  { %438 = vst [vmem:[#allocation2 + $0x48] sm:$0xff] %v426_v27 }
 0x1e8   :  { %439 = vst [vmem:[#allocation2 + $0x50] sm:$0xff] %v427_v28 }
 0x1e9   :  { %440 = vst [vmem:[#allocation2 + $0x58] sm:$0xff] %v428_v29 }
 0x1ea   :  { %453 = dma.vmem_to_hbm [thread:$0]  %s446_s2, 1536, %s448_s13, [#allocation3], %s665_s14, %s665_s14, %s666_s15  }
 0x1eb   :  { %662 = dma.done.wait [#allocation3], 1536  }
 0x1ec   :  { %663 = vsyncadd [#allocation3], 4294965760 }
 0x1ed   :  { %458 = vsyncpa [#allocation3], 1 }

</bundles_post_ra>
